<compile_context>
chip_gen: v5e
topology: v5e:2x2
jax: 0.10.0
libtpu: 0.0.40
codegen_flags: <defaults>
</compile_context>

<pallas_src>
import functools

import jax
import jax.numpy as jnp
import numpy as np
from jax.experimental import pallas as pl
from jax.experimental.pallas import tpu as pltpu

D = 4             # number of hidden Linear+ReLU layers
W = 256           # hidden width
INPUT_CH = 50     # input_ch_bm
OUT_CH = 30       # out_ch

PAD_IN = 64                 # input channels padded to a lane/K-friendly width
HEAD_PAD = 64               # each head padded from 30 -> 64 output columns
HEAD_OUT = 2 * HEAD_PAD     # fused, lane-dense head output width (128)


def style_kernel(x_ref,
                 w0_ref, b0_ref, w1_ref, b1_ref, w2_ref, b2_ref, w3_ref, b3_ref,
                 wh_ref, bh_ref,
                 out_ref):
    # Trunk: (TB, 64) @ (64, 256) -> relu -> 3x [(TB, 256) @ (256, 256) -> relu]
    h = x_ref[...]  # bf16 input tile
    for w_ref, b_ref in ((w0_ref, b0_ref), (w1_ref, b1_ref),
                         (w2_ref, b2_ref), (w3_ref, b3_ref)):
        acc = jnp.dot(h, w_ref[...], preferred_element_type=jnp.float32)
        h = jnp.maximum(acc + b_ref[...], 0.0).astype(jnp.bfloat16)
    # Fused heads: one (TB, 256) @ (256, 128) matmul, lane-dense output block.
    out = jnp.dot(h, wh_ref[...], preferred_element_type=jnp.float32) + bh_ref[...]
    out_ref[...] = out.astype(out_ref.dtype)


def _round_up(n, m):
    return ((n + m - 1) // m) * m


@functools.partial(jax.jit, static_argnames=("tile_b",))
def _style_forward_impl(bmcodes, kernel_params, tile_b):
    N, C = bmcodes.shape

    # Pad batch to a multiple of tile_b, pad channels 50 -> 64, cast to bf16.
    n_total = _round_up(N, tile_b)
    x = jnp.pad(bmcodes, ((0, n_total - N), (0, PAD_IN - C))).astype(jnp.bfloat16)

    (w0, b0), (w1, b1), (w2, b2), (w3, b3) = kernel_params["trunk"]
    wh, bh = kernel_params["fused_head"]
    weight_args = [w0, b0, w1, b1, w2, b2, w3, b3, wh, bh]

    def full_spec(arr):
        # Grid-invariant weight/bias: whole array, constant block index
        # (stays resident in VMEM; no re-DMA across grid steps).
        return pl.BlockSpec(arr.shape, lambda i: (0,) * arr.ndim)

    in_specs = [pl.BlockSpec((tile_b, PAD_IN), lambda i: (i, 0))]
    in_specs += [full_spec(a) for a in weight_args]
    out_specs = pl.BlockSpec((tile_b, HEAD_OUT), lambda i: (i, 0))

    flops = 2 * n_total * (PAD_IN * W + (D - 1) * W * W + W * HEAD_OUT)
    bytes_accessed = (x.size * x.dtype.itemsize
                      + sum(int(a.size) * a.dtype.itemsize for a in weight_args)
                      + n_total * HEAD_OUT * 4)

    out = pl.pallas_call(
        style_kernel,
        out_shape=jax.ShapeDtypeStruct((n_total, HEAD_OUT), jnp.float32),
        grid_spec=pltpu.PrefetchScalarGridSpec(
            num_scalar_prefetch=0,
            grid=(n_total // tile_b,),
            in_specs=in_specs,
            out_specs=out_specs,
        ),
        compiler_params=pltpu.CompilerParams(
            dimension_semantics=("parallel",)),
        cost_estimate=pl.CostEstimate(
            flops=int(flops), transcendentals=0,
            bytes_accessed=int(bytes_accessed)),
    )(x, *weight_args)

    # Slice back to the module's (N, 30) + (N, 30) outputs (free layout plumbing).
    scale = out[:N, :OUT_CH]
    bias = out[:N, HEAD_PAD:HEAD_PAD + OUT_CH]
    return scale, bias


def style_module_forward(bmcodes, kernel_params, *, tile_b=256):
    """bmcodes: (N, 50) f32.  kernel_params: output of pack_params()."""
    N, C = bmcodes.shape
    assert C == INPUT_CH
    # Shrink the batch tile for tiny batches so padding/compute waste stays minimal,
    # but keep it sublane-aligned (multiple of 8).
    tile_eff = int(min(tile_b, max(8, _round_up(N, 8))))
    tile_eff = _round_up(tile_eff, 8)
    return _style_forward_impl(bmcodes, kernel_params, tile_eff)


def init_params(key):
    """Deterministic init mirroring the PyTorch module:
    xavier_uniform_(weight, gain=calculate_gain('relu')) and the default
    nn.Linear bias init U(-1/sqrt(fan_in), 1/sqrt(fan_in)).
    Weights stored as (in_features, out_features), f32."""
    gain = float(np.sqrt(2.0))  # calculate_gain('relu')

    def linear(k, fan_in, fan_out):
        kw, kb = jax.random.split(k)
        limit = gain * float(np.sqrt(6.0 / (fan_in + fan_out)))
        w = jax.random.uniform(kw, (fan_in, fan_out), jnp.float32, -limit, limit)
        blim = 1.0 / float(np.sqrt(fan_in))
        b = jax.random.uniform(kb, (1, fan_out), jnp.float32, -blim, blim)
        return w, b

    keys = jax.random.split(key, D + 2)
    trunk = []
    fan_in = INPUT_CH
    for i in range(D):
        trunk.append(linear(keys[i], fan_in, W))
        fan_in = W
    scale_head = linear(keys[D], W, OUT_CH)
    bias_head = linear(keys[D + 1], W, OUT_CH)
    return {"trunk": trunk, "scale_head": scale_head, "bias_head": bias_head}


def pack_params(params_f32):
    """Pack f32 params into the kernel's padded / bf16 layout.
    - w0 rows zero-padded 50 -> 64 (matches zero-padded input columns).
    - head weights zero-padded 30 -> 64 cols each, concatenated to (256, 128).
    - matmul weights stored bf16; biases stay f32 (added in f32 inside kernel)."""
    trunk = []
    for i, (w, b) in enumerate(params_f32["trunk"]):
        if i == 0:
            w = jnp.pad(w, ((0, PAD_IN - w.shape[0]), (0, 0)))
        trunk.append((w.astype(jnp.bfloat16), b))
    ws, bs = params_f32["scale_head"]
    wb, bb = params_f32["bias_head"]
    wh = jnp.concatenate(
        [jnp.pad(ws, ((0, 0), (0, HEAD_PAD - OUT_CH))),
         jnp.pad(wb, ((0, 0), (0, HEAD_PAD - OUT_CH)))], axis=1)
    bh = jnp.concatenate(
        [jnp.pad(bs, ((0, 0), (0, HEAD_PAD - OUT_CH))),
         jnp.pad(bb, ((0, 0), (0, HEAD_PAD - OUT_CH)))], axis=1)
    return {"trunk": trunk, "fused_head": (wh.astype(jnp.bfloat16), bh)}


def reference_forward(bmcodes, params_f32):
    """Pure-JAX reference mirroring the kernel's bf16 matmul-operand rounding
    (f32 accumulation), so the tolerance check is tight."""
    bf = lambda a: a.astype(jnp.bfloat16).astype(jnp.float32)
    h = bf(bmcodes)
    for w, b in params_f32["trunk"]:
        h = bf(jnp.maximum(h @ bf(w) + b, 0.0))
    ws, bs = params_f32["scale_head"]
    wb, bb = params_f32["bias_head"]
    return h @ bf(ws) + bs, h @ bf(wb) + bb


if __name__ == "__main__":
    key = jax.random.PRNGKey(0)
    kp, kx = jax.random.split(key)

    params_f32 = init_params(kp)
    kernel_params = pack_params(params_f32)

    N = 8  # small batch; wrapper pads to one sublane-aligned tile
    bmcodes = jax.random.normal(kx, (N, INPUT_CH), jnp.float32)

    scale, bias = style_module_forward(bmcodes, kernel_params, tile_b=256)
    scale = jax.block_until_ready(scale)
    bias = jax.block_until_ready(bias)

    ref_scale, ref_bias = reference_forward(bmcodes, params_f32)
    assert scale.shape == (N, OUT_CH) and bias.shape == (N, OUT_CH)
    assert jnp.allclose(scale, ref_scale, atol=1e-2, rtol=1e-2)
    assert jnp.allclose(bias, ref_bias, atol=1e-2, rtol=1e-2)

    print("KERNEL_OK")
</pallas_src>

<mosaic_0001>
module attributes {stable_mosaic.version = 11 : i64} {
  func.func @style_kernel(%arg0: i32, %arg1: memref<8x64xbf16, #tpu.memory_space<vmem>>, %arg2: memref<64x256xbf16, #tpu.memory_space<vmem>>, %arg3: memref<1x256xf32, #tpu.memory_space<vmem>>, %arg4: memref<256x256xbf16, #tpu.memory_space<vmem>>, %arg5: memref<1x256xf32, #tpu.memory_space<vmem>>, %arg6: memref<256x256xbf16, #tpu.memory_space<vmem>>, %arg7: memref<1x256xf32, #tpu.memory_space<vmem>>, %arg8: memref<256x256xbf16, #tpu.memory_space<vmem>>, %arg9: memref<1x256xf32, #tpu.memory_space<vmem>>, %arg10: memref<256x128xbf16, #tpu.memory_space<vmem>>, %arg11: memref<1x128xf32, #tpu.memory_space<vmem>>, %arg12: memref<8x128xf32, #tpu.memory_space<vmem>>) attributes {dimension_semantics = [#tpu.dimension_semantics<parallel>], iteration_bounds = array<i64: 1>, scalar_prefetch = 0 : i64, scratch_operands = 0 : i64, tpu.core_type = #tpu.core_type<tc>, window_params = [{transform_indices = @transform_0, window_bounds = array<i64: 8, 64>}, {pipeline_mode = #tpu.pipeline_mode<synchronous>, transform_indices = @transform_1, window_bounds = array<i64: 64, 256>}, {pipeline_mode = #tpu.pipeline_mode<synchronous>, transform_indices = @transform_2, window_bounds = array<i64: 1, 256>}, {pipeline_mode = #tpu.pipeline_mode<synchronous>, transform_indices = @transform_3, window_bounds = array<i64: 256, 256>}, {pipeline_mode = #tpu.pipeline_mode<synchronous>, transform_indices = @transform_4, window_bounds = array<i64: 1, 256>}, {pipeline_mode = #tpu.pipeline_mode<synchronous>, transform_indices = @transform_5, window_bounds = array<i64: 256, 256>}, {pipeline_mode = #tpu.pipeline_mode<synchronous>, transform_indices = @transform_6, window_bounds = array<i64: 1, 256>}, {pipeline_mode = #tpu.pipeline_mode<synchronous>, transform_indices = @transform_7, window_bounds = array<i64: 256, 256>}, {pipeline_mode = #tpu.pipeline_mode<synchronous>, transform_indices = @transform_8, window_bounds = array<i64: 1, 256>}, {pipeline_mode = #tpu.pipeline_mode<synchronous>, transform_indices = @transform_9, window_bounds = array<i64: 256, 128>}, {pipeline_mode = #tpu.pipeline_mode<synchronous>, transform_indices = @transform_10, window_bounds = array<i64: 1, 128>}, {transform_indices = @transform_11, window_bounds = array<i64: 8, 128>}]} {
    %c0 = arith.constant 0 : index
    %c0_0 = arith.constant 0 : index
    %0 = vector.load %arg1[%c0, %c0_0] : memref<8x64xbf16, #tpu.memory_space<vmem>>, vector<8x64xbf16>
    %c0_1 = arith.constant 0 : index
    %c0_2 = arith.constant 0 : index
    %1 = vector.load %arg2[%c0_1, %c0_2] : memref<64x256xbf16, #tpu.memory_space<vmem>>, vector<64x256xbf16>
    %cst = arith.constant dense<0.000000e+00> : vector<8x256xf32>
    %2 = tpu.matmul %0, %1, %cst {dimension_numbers = #tpu.dot_dimension_numbers<[1], [0], [0], [1], [0, 0, 1, 1], [], []>} : vector<8x64xbf16>, vector<64x256xbf16>, vector<8x256xf32> -> vector<8x256xf32>
    %c0_3 = arith.constant 0 : index
    %c0_4 = arith.constant 0 : index
    %3 = vector.load %arg3[%c0_3, %c0_4] : memref<1x256xf32, #tpu.memory_space<vmem>>, vector<1x256xf32>
    %4 = vector.broadcast %3 : vector<1x256xf32> to vector<8x256xf32>
    %5 = arith.addf %2, %4 : vector<8x256xf32>
    %cst_5 = arith.constant 0.000000e+00 : f32
    %6 = vector.broadcast %cst_5 : f32 to vector<8x256xf32>
    %7 = arith.maximumf %5, %6 : vector<8x256xf32>
    %8 = arith.truncf %7 : vector<8x256xf32> to vector<8x256xbf16>
    %c0_6 = arith.constant 0 : index
    %c0_7 = arith.constant 0 : index
    %9 = vector.load %arg4[%c0_6, %c0_7] : memref<256x256xbf16, #tpu.memory_space<vmem>>, vector<256x256xbf16>
    %cst_8 = arith.constant dense<0.000000e+00> : vector<8x256xf32>
    %10 = tpu.matmul %8, %9, %cst_8 {dimension_numbers = #tpu.dot_dimension_numbers<[1], [0], [0], [1], [0, 0, 1, 1], [], []>} : vector<8x256xbf16>, vector<256x256xbf16>, vector<8x256xf32> -> vector<8x256xf32>
    %c0_9 = arith.constant 0 : index
    %c0_10 = arith.constant 0 : index
    %11 = vector.load %arg5[%c0_9, %c0_10] : memref<1x256xf32, #tpu.memory_space<vmem>>, vector<1x256xf32>
    %12 = vector.broadcast %11 : vector<1x256xf32> to vector<8x256xf32>
    %13 = arith.addf %10, %12 : vector<8x256xf32>
    %cst_11 = arith.constant 0.000000e+00 : f32
    %14 = vector.broadcast %cst_11 : f32 to vector<8x256xf32>
    %15 = arith.maximumf %13, %14 : vector<8x256xf32>
    %16 = arith.truncf %15 : vector<8x256xf32> to vector<8x256xbf16>
    %c0_12 = arith.constant 0 : index
    %c0_13 = arith.constant 0 : index
    %17 = vector.load %arg6[%c0_12, %c0_13] : memref<256x256xbf16, #tpu.memory_space<vmem>>, vector<256x256xbf16>
    %cst_14 = arith.constant dense<0.000000e+00> : vector<8x256xf32>
    %18 = tpu.matmul %16, %17, %cst_14 {dimension_numbers = #tpu.dot_dimension_numbers<[1], [0], [0], [1], [0, 0, 1, 1], [], []>} : vector<8x256xbf16>, vector<256x256xbf16>, vector<8x256xf32> -> vector<8x256xf32>
    %c0_15 = arith.constant 0 : index
    %c0_16 = arith.constant 0 : index
    %19 = vector.load %arg7[%c0_15, %c0_16] : memref<1x256xf32, #tpu.memory_space<vmem>>, vector<1x256xf32>
    %20 = vector.broadcast %19 : vector<1x256xf32> to vector<8x256xf32>
    %21 = arith.addf %18, %20 : vector<8x256xf32>
    %cst_17 = arith.constant 0.000000e+00 : f32
    %22 = vector.broadcast %cst_17 : f32 to vector<8x256xf32>
    %23 = arith.maximumf %21, %22 : vector<8x256xf32>
    %24 = arith.truncf %23 : vector<8x256xf32> to vector<8x256xbf16>
    %c0_18 = arith.constant 0 : index
    %c0_19 = arith.constant 0 : index
    %25 = vector.load %arg8[%c0_18, %c0_19] : memref<256x256xbf16, #tpu.memory_space<vmem>>, vector<256x256xbf16>
    %cst_20 = arith.constant dense<0.000000e+00> : vector<8x256xf32>
    %26 = tpu.matmul %24, %25, %cst_20 {dimension_numbers = #tpu.dot_dimension_numbers<[1], [0], [0], [1], [0, 0, 1, 1], [], []>} : vector<8x256xbf16>, vector<256x256xbf16>, vector<8x256xf32> -> vector<8x256xf32>
    %c0_21 = arith.constant 0 : index
    %c0_22 = arith.constant 0 : index
    %27 = vector.load %arg9[%c0_21, %c0_22] : memref<1x256xf32, #tpu.memory_space<vmem>>, vector<1x256xf32>
    %28 = vector.broadcast %27 : vector<1x256xf32> to vector<8x256xf32>
    %29 = arith.addf %26, %28 : vector<8x256xf32>
    %cst_23 = arith.constant 0.000000e+00 : f32
    %30 = vector.broadcast %cst_23 : f32 to vector<8x256xf32>
    %31 = arith.maximumf %29, %30 : vector<8x256xf32>
    %32 = arith.truncf %31 : vector<8x256xf32> to vector<8x256xbf16>
    %c0_24 = arith.constant 0 : index
    %c0_25 = arith.constant 0 : index
    %33 = vector.load %arg10[%c0_24, %c0_25] : memref<256x128xbf16, #tpu.memory_space<vmem>>, vector<256x128xbf16>
    %cst_26 = arith.constant dense<0.000000e+00> : vector<8x128xf32>
    %34 = tpu.matmul %32, %33, %cst_26 {dimension_numbers = #tpu.dot_dimension_numbers<[1], [0], [0], [1], [0, 0, 1, 1], [], []>} : vector<8x256xbf16>, vector<256x128xbf16>, vector<8x128xf32> -> vector<8x128xf32>
    %c0_27 = arith.constant 0 : index
    %c0_28 = arith.constant 0 : index
    %35 = vector.load %arg11[%c0_27, %c0_28] : memref<1x128xf32, #tpu.memory_space<vmem>>, vector<1x128xf32>
    %36 = vector.broadcast %35 : vector<1x128xf32> to vector<8x128xf32>
    %37 = arith.addf %34, %36 : vector<8x128xf32>
    %c0_29 = arith.constant 0 : index
    %c0_30 = arith.constant 0 : index
    %38 = vector.load %arg12[%c0_29, %c0_30] : memref<8x128xf32, #tpu.memory_space<vmem>>, vector<8x128xf32>
    tpu.vector_store %arg12[%c0_29, %c0_30], %37 {strides = array<i32>} : memref<8x128xf32, #tpu.memory_space<vmem>>, vector<8x128xf32>,
    return
  }
  func.func @transform_0(%arg0: i32) -> (i32, i32) {
    %c0_i32 = arith.constant 0 : i32
    %c0_i32_0 = arith.constant 0 : i32
    return %arg0, %c0_i32 : i32, i32
  }
  func.func @transform_1(%arg0: i32) -> (i32, i32) {
    %c0_i32 = arith.constant 0 : i32
    %c0_i32_0 = arith.constant 0 : i32
    %c0_i32_1 = arith.constant 0 : i32
    return %c0_i32, %c0_i32_0 : i32, i32
  }
  func.func @transform_2(%arg0: i32) -> (i32, i32) {
    %c0_i32 = arith.constant 0 : i32
    %c0_i32_0 = arith.constant 0 : i32
    %c0_i32_1 = arith.constant 0 : i32
    return %c0_i32, %c0_i32_0 : i32, i32
  }
  func.func @transform_3(%arg0: i32) -> (i32, i32) {
    %c0_i32 = arith.constant 0 : i32
    %c0_i32_0 = arith.constant 0 : i32
    %c0_i32_1 = arith.constant 0 : i32
    return %c0_i32, %c0_i32_0 : i32, i32
  }
  func.func @transform_4(%arg0: i32) -> (i32, i32) {
    %c0_i32 = arith.constant 0 : i32
    %c0_i32_0 = arith.constant 0 : i32
    %c0_i32_1 = arith.constant 0 : i32
    return %c0_i32, %c0_i32_0 : i32, i32
  }
  func.func @transform_5(%arg0: i32) -> (i32, i32) {
    %c0_i32 = arith.constant 0 : i32
    %c0_i32_0 = arith.constant 0 : i32
    %c0_i32_1 = arith.constant 0 : i32
    return %c0_i32, %c0_i32_0 : i32, i32
  }
  func.func @transform_6(%arg0: i32) -> (i32, i32) {
    %c0_i32 = arith.constant 0 : i32
    %c0_i32_0 = arith.constant 0 : i32
    %c0_i32_1 = arith.constant 0 : i32
    return %c0_i32, %c0_i32_0 : i32, i32
  }
  func.func @transform_7(%arg0: i32) -> (i32, i32) {
    %c0_i32 = arith.constant 0 : i32
    %c0_i32_0 = arith.constant 0 : i32
    %c0_i32_1 = arith.constant 0 : i32
    return %c0_i32, %c0_i32_0 : i32, i32
  }
  func.func @transform_8(%arg0: i32) -> (i32, i32) {
    %c0_i32 = arith.constant 0 : i32
    %c0_i32_0 = arith.constant 0 : i32
    %c0_i32_1 = arith.constant 0 : i32
    return %c0_i32, %c0_i32_0 : i32, i32
  }
  func.func @transform_9(%arg0: i32) -> (i32, i32) {
    %c0_i32 = arith.constant 0 : i32
    %c0_i32_0 = arith.constant 0 : i32
    %c0_i32_1 = arith.constant 0 : i32
    return %c0_i32, %c0_i32_0 : i32, i32
  }
  func.func @transform_10(%arg0: i32) -> (i32, i32) {
    %c0_i32 = arith.constant 0 : i32
    %c0_i32_0 = arith.constant 0 : i32
    %c0_i32_1 = arith.constant 0 : i32
    return %c0_i32, %c0_i32_0 : i32, i32
  }
  func.func @transform_11(%arg0: i32) -> (i32, i32) {
    %c0_i32 = arith.constant 0 : i32
    %c0_i32_0 = arith.constant 0 : i32
    return %arg0, %c0_i32 : i32, i32
  }
}

</mosaic_0001>

<bundles_post_ra>
// kernel: _style_forward_impl.1
= control target key start
LH: loop header
LB: loop body
LE: loop exit
PB: predicated region body
PF: predicated region fallthrough
CT: control target
= control target key end

     0   :  { %16 = vsyncpa [#allocation3], 0  ;;  %s1979_s0 = inlined_call_operand.vmem [shape: bf16[8,64], index: 0, kind: input, shape index: {}]   ;;  %s1980_s1 = inlined_call_operand.hbm [shape: bf16[64,256], index: 1, kind: input, shape index: {}]   ;;  %s1981_s2 = inlined_call_operand.vmem [shape: f32[1,256], index: 2, kind: input, shape index: {}]   ;;  %s1982_s3 = inlined_call_operand.hbm [shape: bf16[256,256], index: 3, kind: input, shape index: {}]   ;;  %s1983_s4 = inlined_call_operand.vmem [shape: f32[1,256], index: 4, kind: input, shape index: {}]   ;;  %s1984_s5 = inlined_call_operand.hbm [shape: bf16[256,256], index: 5, kind: input, shape index: {}]   ;;  %s1985_s6 = inlined_call_operand.vmem [shape: f32[1,256], index: 6, kind: input, shape index: {}]   ;;  %s1986_s7 = inlined_call_operand.hbm [shape: bf16[256,256], index: 7, kind: input, shape index: {}]   ;;  %s1987_s8 = inlined_call_operand.vmem [shape: f32[1,256], index: 8, kind: input, shape index: {}]   ;;  %s1988_s9 = inlined_call_operand.hbm [shape: bf16[256,128], index: 9, kind: input, shape index: {}]   ;;  %s1989_s10 = inlined_call_operand.vmem [shape: f32[1,128], index: 10, kind: input, shape index: {}]   ;;  %s1990_s11 = inlined_call_operand.vmem [shape: f32[8,128], index: 11, kind: output, shape index: {}]  }
   0x1   :  { %17 = vsyncpa [#allocation5], 0 }
   0x2   :  { %18 = vsyncpa [#allocation8], 0  ;;  %s40_s19 = sshll.u32 %s1982_s3, 4  ;;  %s1872_s20 = smov [#allocation4]   ;;  %s41_s19 = int_to_ptr.hbm [resolvable:$true] %s40_s19 }
   0x3   :  { %s42_s21 = sshll.u32 %s1872_s20, 4  ;;  %s70_s24 = sshll.u32 %s1986_s7, 4  ;;  %s43_s21 = int_to_ptr.vmem [resolvable:$true] %s42_s21  ;;  %s71_s24 = int_to_ptr.hbm [resolvable:$true] %s70_s24 }
   0x4   :  { %s1873_s25 = smov 128   ;;  %s1874_s26 = smov 8  }
   0x5   :  { %48 = dma.hbm_to_vmem [thread:$0]  %s41_s19, 4096, %s43_s21, [#allocation5], %s1873_s25, %s1873_s25, %s1874_s26  }
   0x6   :  { %s1875_s27 = smov [#allocation7]   ;;  %s25_s12 = sshll.u32 %s1980_s1, 4  ;;  %s26_s12 = int_to_ptr.hbm [resolvable:$true] %s25_s12 }
   0x7   :  { %s72_s28 = sshll.u32 %s1875_s27, 4  ;;  %s55_s14 = sshll.u32 %s1984_s5, 4  ;;  %s73_s28 = int_to_ptr.vmem [resolvable:$true] %s72_s28  ;;  %s56_s14 = int_to_ptr.hbm [resolvable:$true] %s55_s14 }
   0x8   :  { %78 = dma.hbm_to_vmem [thread:$0]  %s71_s24, 4096, %s73_s28, [#allocation8], %s1873_s25, %s1873_s25, %s1874_s26  }
   0x9   :  { %s1876_s15 = smov [#allocation2]   ;;  %s1877_s7 = smov [#allocation6]  }
   0xa   :  { %s27_s16 = sshll.u32 %s1876_s15, 4  ;;  %s57_s17 = sshll.u32 %s1877_s7, 4  ;;  %s28_s16 = int_to_ptr.vmem [resolvable:$true] %s27_s16  ;;  %s58_s17 = int_to_ptr.vmem [resolvable:$true] %s57_s17 }
   0xb   :  { %33 = dma.hbm_to_vmem [thread:$0]  %s26_s12, 1024, %s28_s16, [#allocation3], %s1873_s25, %s1873_s25, %s1874_s26  }
   0xc   :  { %s85_s20 = sshll.u32 %s1988_s9, 4  ;;  %s1878_s1 = smov [#allocation9]   ;;  %s86_s20 = int_to_ptr.hbm [resolvable:$true] %s85_s20 }
   0xd   :  { %63 = dma.hbm_to_vmem [thread:$0]  %s56_s14, 4096, %s58_s17, [#allocation5], %s1873_s25, %s1873_s25, %s1874_s26  }
   0xe   :  { %s87_s21 = sshll.u32 %s1878_s1, 4  ;;  %s1879_s22 = smov 64   ;;  %s88_s21 = int_to_ptr.vmem [resolvable:$true] %s87_s21 }
   0xf   :  { %s1880_s23 = smov 4  }
  0x10   :  { %93 = dma.hbm_to_vmem [thread:$0]  %s86_s20, 2048, %s88_s21, [#allocation8], %s1879_s22, %s1879_s22, %s1880_s23  }
  0x11   :  { %1866 = dma.done.wait [#allocation3], 1024  }
  0x12   :  { %1867 = vsyncadd [#allocation3], 4294966272 }
  0x13   :  { %1868 = dma.done.wait [#allocation5], 8192  }
  0x14   :  { %1869 = vsyncadd [#allocation5], 4294959104 }
  0x15   :  { %1870 = dma.done.wait [#allocation8], 6144  }
  0x16   :  { %1871 = vsyncadd [#allocation8], 4294961152  ;;  %v1160_v0 = vld [vmem:[#allocation2 + $0x30] sm:$0xf]  ;;  %v1623_v1 = vld [vmem:[#allocation2 + $0x34] sm:$0xf0] }
  0x17   :  { %v1622_v2 = vld [vmem:[#allocation2 + $0x34] sm:$0xf]  ;;  %v1161_v3 = vor.u32 %v1623_v1, %v1160_v0  ;;  %v1162_v4 = vld [vmem:[#allocation2 + $0x38] sm:$0xf0]  ;;  %v1152_v5 = vld [vmem:[#allocation2 + $0x20] sm:$0xf] }
  0x18   :  { %v1621_v6 = vld [vmem:[#allocation2 + $0x24] sm:$0xf0]  ;;  %v1165_v7 = vor.u32 %v1622_v2, %v1162_v4  ;;  %v1620_v8 = vld [vmem:[#allocation2 + $0x24] sm:$0xf]  ;;  %v1154_v9 = vld [vmem:[#allocation2 + $0x28] sm:$0xf0] }
  0x19   :  { %180 = vmatpush.bf16.msra.mxu0 %v1161_v3  ;;  %v1153_v10 = vor.u32 %v1621_v6, %v1152_v5  ;;  %v1157_v11 = vor.u32 %v1620_v8, %v1154_v9  ;;  %v1144_v12 = vld [vmem:[#allocation2 + $0x10] sm:$0xf]  ;;  %v1619_v13 = vld [vmem:[#allocation2 + $0x14] sm:$0xf0]  ;;  %v1618_v14 = vld [vmem:[#allocation2 + $0x14] sm:$0xf] }
  0x1a   :  { %193 = vmatpush.bf16.msra.mxu1 %v1165_v7  ;;  %v1146_v15 = vld [vmem:[#allocation2 + $0x18] sm:$0xf0]  ;;  %v1226_v16 = vld [vmem:[#allocation4 + $0x70] sm:$0xf]  ;;  %v1136_v17 = vld [vmem:[#allocation2] sm:$0xf]  ;;  %v1145_v21 = vor.u32 %v1619_v13, %v1144_v12 }
  0x1b   :  { %v1639_v18 = vld [vmem:[#allocation4 + $0x74] sm:$0xf0]  ;;  %v1290_v19 = vld [vmem:[#allocation4 + $0xf0] sm:$0xf]  ;;  %v1617_v22 = vld [vmem:[#allocation2 + $0x4] sm:$0xf0]  ;;  %v1149_v27 = vor.u32 %v1618_v14, %v1146_v15 }
  0x1c   :  { %v1655_v20 = vld [vmem:[#allocation4 + $0xf4] sm:$0xf0]  ;;  %v1616_v23 = vld [vmem:[#allocation2 + $0x4] sm:$0xf]  ;;  %v1138_v24 = vld [vmem:[#allocation2 + $0x8] sm:$0xf0]  ;;  %v1227_v25 = vor.u32 %v1639_v18, %v1226_v16  ;;  %v1137_v38 = vor.u32 %v1617_v22, %v1136_v17 }
  0x1d   :  { %181 = vmatpush.bf16.msra.mxu0 %v1153_v10  ;;  %v1291_v26 = vor.u32 %v1655_v20, %v1290_v19  ;;  %v1638_v28 = vld [vmem:[#allocation4 + $0x74] sm:$0xf]  ;;  %v1218_v29 = vld [vmem:[#allocation4 + $0x60] sm:$0xf]  ;;  %v1637_v30 = vld [vmem:[#allocation4 + $0x64] sm:$0xf0]  ;;  %v1141_v42 = vor.u32 %v1616_v23, %v1138_v24 }
  0x1e   :  { %194 = vmatpush.bf16.msra.mxu1 %v1157_v11  ;;  %404 = vmatpush.bf16.msra.mxu2 %v1227_v25  ;;  %v1228_v31 = vld [vmem:[#allocation4 + $0x78] sm:$0xf0]  ;;  %v1219_v32 = vor.u32 %v1637_v30, %v1218_v29  ;;  %v1282_v33 = vld [vmem:[#allocation4 + $0xe0] sm:$0xf]  ;;  %v1653_v34 = vld [vmem:[#allocation4 + $0xe4] sm:$0xf0] }
  0x1f   :  { %417 = vmatpush.bf16.msra.mxu3 %v1291_v26  ;;  %v1654_v35 = vld [vmem:[#allocation4 + $0xf4] sm:$0xf]  ;;  %v1292_v36 = vld [vmem:[#allocation4 + $0xf8] sm:$0xf0]  ;;  %v1283_v37 = vor.u32 %v1653_v34, %v1282_v33  ;;  %v1210_v39 = vld [vmem:[#allocation4 + $0x50] sm:$0xf]  ;;  %v1231_v43 = vor.u32 %v1638_v28, %v1228_v31 }
  0x20   :  { %v1635_v40 = vld [vmem:[#allocation4 + $0x54] sm:$0xf0]  ;;  %v1274_v41 = vld [vmem:[#allocation4 + $0xd0] sm:$0xf]  ;;  %vm172_vm0 = vcmask 523264   ;;  %v1295_v45 = vor.u32 %v1654_v35, %v1292_v36 }
  0x21   :  { %182 = vmatpush.bf16.msra.mxu0 %v1145_v21  ;;  %v1651_v44 = vld [vmem:[#allocation4 + $0xd4] sm:$0xf0]  ;;  %v1636_v46 = vld [vmem:[#allocation4 + $0x64] sm:$0xf]  ;;  %v1220_v47 = vld [vmem:[#allocation4 + $0x68] sm:$0xf0]  ;;  %v1211_v49 = vor.u32 %v1635_v40, %v1210_v39 }
  0x22   :  { %195 = vmatpush.bf16.msra.mxu1 %v1149_v27  ;;  %405 = vmatpush.bf16.msra.mxu2 %v1219_v32  ;;  %v1652_v48 = vld [vmem:[#allocation4 + $0xe4] sm:$0xf]  ;;  %v1284_v50 = vld [vmem:[#allocation4 + $0xe8] sm:$0xf0]  ;;  %v1275_v51 = vor.u32 %v1651_v44, %v1274_v41  ;;  %v1202_v52 = vld [vmem:[#allocation4 + $0x40] sm:$0xf]  ;;  %v1223_v57 = vor.u32 %v1636_v46, %v1220_v47 }
  0x23   :  { %418 = vmatpush.bf16.msra.mxu3 %v1283_v37  ;;  %v1633_v53 = vld [vmem:[#allocation4 + $0x44] sm:$0xf0]  ;;  %v117_v54 = vld [vmem:[%s1979_s0] sm:$0xf]  ;;  %v1287_v58 = vor.u32 %v1652_v48, %v1284_v50  ;;  %v1634_v59 = vld [vmem:[#allocation4 + $0x54] sm:$0xf] }
  0x24   :  { %v1266_v55 = vld [vmem:[#allocation4 + $0xc0] sm:$0xf]  ;;  %v1649_v56 = vld [vmem:[#allocation4 + $0xc4] sm:$0xf0]  ;;  %v1212_v60 = vld [vmem:[#allocation4 + $0x58] sm:$0xf0]  ;;  %v1203_v62 = vor.u32 %v1633_v53, %v1202_v52 }
  0x25   :  { %183 = vmatpush.bf16.msra.mxu0 %v1137_v38  ;;  %v1650_v61 = vld [vmem:[#allocation4 + $0xd4] sm:$0xf]  ;;  %v1276_v63 = vld [vmem:[#allocation4 + $0xd8] sm:$0xf0]  ;;  %v1267_v0 = vor.u32 %v1649_v56, %v1266_v55  ;;  %v1194_v1 = vld [vmem:[#allocation4 + $0x30] sm:$0xf]  ;;  %v1215_v5 = vor.u32 %v1634_v59, %v1212_v60 }
  0x26   :  { %196 = vmatpush.bf16.msra.mxu1 %v1141_v42  ;;  %406 = vmatpush.bf16.msra.mxu2 %v1211_v49  ;;  %v1631_v2 = vld [vmem:[#allocation4 + $0x34] sm:$0xf0]  ;;  %v1258_v3 = vld [vmem:[#allocation4 + $0xb0] sm:$0xf]  ;;  %v1632_v6 = vld [vmem:[#allocation4 + $0x44] sm:$0xf]  ;;  %v1279_v7 = vor.u32 %v1650_v61, %v1276_v63 }
  0x27   :  { %419 = vmatpush.bf16.msra.mxu3 %v1275_v51  ;;  %v1647_v4 = vld [vmem:[#allocation4 + $0xb4] sm:$0xf0]  ;;  %v1204_v8 = vld [vmem:[#allocation4 + $0x48] sm:$0xf0]  ;;  %v1648_v9 = vld [vmem:[#allocation4 + $0xc4] sm:$0xf]  ;;  %v1195_v11 = vor.u32 %v1631_v2, %v1194_v1 }
  0x28   :  { %1166 = vmatmul.msk.bf16.vlgmr.msra.gmra.mxu0 %vm172_vm0, %v117_v54  ;;  %v1268_v10 = vld [vmem:[#allocation4 + $0xc8] sm:$0xf0]  ;;  %v1259_v12 = vor.u32 %v1647_v4, %v1258_v3  ;;  %v1186_v13 = vld [vmem:[#allocation4 + $0x20] sm:$0xf]  ;;  %v1629_v14 = vld [vmem:[#allocation4 + $0x24] sm:$0xf0]  ;;  %v1207_v17 = vor.u32 %v1632_v6, %v1204_v8 }
  0x29   :  { %430 = vmatpush.bf16.msrb.mxu0 %v1231_v43  ;;  %1167 = vmatmul.msk.bf16.vlgmr.msra.gmra.mxu1 %vm172_vm0, %v117_v54  ;;  %v1250_v15 = vld [vmem:[#allocation4 + $0xa0] sm:$0xf]  ;;  %v1645_v16 = vld [vmem:[#allocation4 + $0xa4] sm:$0xf0]  ;;  %v1271_v18 = vor.u32 %v1648_v9, %v1268_v10  ;;  %v1630_v19 = vld [vmem:[#allocation4 + $0x34] sm:$0xf]  ;;  %v1187_v21 = vor.u32 %v1629_v14, %v1186_v13 }
  0x2a   :  { %443 = vmatpush.bf16.msrb.mxu1 %v1295_v45  ;;  %407 = vmatpush.bf16.msra.mxu2 %v1203_v62  ;;  %v1196_v20 = vld [vmem:[#allocation4 + $0x38] sm:$0xf0]  ;;  %v1646_v22 = vld [vmem:[#allocation4 + $0xb4] sm:$0xf]  ;;  %v1251_v24 = vor.u32 %v1645_v16, %v1250_v15  ;;  %v1628_v27 = vld [vmem:[#allocation4 + $0x24] sm:$0xf] }
  0x2b   :  { %420 = vmatpush.bf16.msra.mxu3 %v1267_v0  ;;  %v1260_v23 = vld [vmem:[#allocation4 + $0xb8] sm:$0xf0]  ;;  %v1199_v25 = vor.u32 %v1630_v19, %v1196_v20  ;;  %v1188_v28 = vld [vmem:[#allocation4 + $0x28] sm:$0xf0]  ;;  %v1644_v29 = vld [vmem:[#allocation4 + $0xa4] sm:$0xf] }
  0x2c   :  { %v1263_v26 = vor.u32 %v1646_v22, %v1260_v23  ;;  %v1252_v30 = vld [vmem:[#allocation4 + $0xa8] sm:$0xf0]  ;;  %v1191_v31 = vor.u32 %v1628_v27, %v1188_v28  ;;  %v1178_v33 = vld [vmem:[#allocation4 + $0x10] sm:$0xf]  ;;  %v1627_v34 = vld [vmem:[#allocation4 + $0x14] sm:$0xf0] }
  0x2d   :  { %431 = vmatpush.bf16.msrb.mxu0 %v1223_v57  ;;  %v1255_v32 = vor.u32 %v1644_v29, %v1252_v30  ;;  %v1242_v35 = vld [vmem:[#allocation4 + $0x90] sm:$0xf]  ;;  %v1179_v36 = vor.u32 %v1627_v34, %v1178_v33  ;;  %v1643_v37 = vld [vmem:[#allocation4 + $0x94] sm:$0xf0]  ;;  %v1626_v38 = vld [vmem:[#allocation4 + $0x14] sm:$0xf] }
  0x2e   :  { %444 = vmatpush.bf16.msrb.mxu1 %v1287_v58  ;;  %408 = vmatpush.bf16.msra.mxu2 %v1195_v11  ;;  %v1180_v39 = vld [vmem:[#allocation4 + $0x18] sm:$0xf0]  ;;  %v1243_v40 = vor.u32 %v1643_v37, %v1242_v35  ;;  %v1642_v42 = vld [vmem:[#allocation4 + $0x94] sm:$0xf]  ;;  %v1170_v45 = vld [vmem:[#allocation4] sm:$0xf] }
  0x2f   :  { %421 = vmatpush.bf16.msra.mxu3 %v1259_v12  ;;  %v1183_v41 = vor.u32 %v1626_v38, %v1180_v39  ;;  %v1244_v43 = vld [vmem:[#allocation4 + $0x98] sm:$0xf0]  ;;  %v1625_v46 = vld [vmem:[#allocation4 + $0x4] sm:$0xf0]  ;;  %v1234_v47 = vld [vmem:[#allocation4 + $0x80] sm:$0xf] }
  0x30   :  { %v1247_v44 = vor.u32 %v1642_v42, %v1244_v43  ;;  %v1171_v48 = vor.u32 %v1625_v46, %v1170_v45  ;;  %v1641_v49 = vld [vmem:[#allocation4 + $0x84] sm:$0xf0]  ;;  %v1624_v50 = vld [vmem:[#allocation4 + $0x4] sm:$0xf]  ;;  %v1172_v51 = vld [vmem:[#allocation4 + $0x8] sm:$0xf0] }
  0x31   :  { %432 = vmatpush.bf16.msrb.mxu0 %v1215_v5  ;;  %v1235_v52 = vor.u32 %v1641_v49, %v1234_v47  ;;  %v1175_v53 = vor.u32 %v1624_v50, %v1172_v51  ;;  %v1640_v54 = vld [vmem:[#allocation4 + $0x84] sm:$0xf]  ;;  %v1236_v55 = vld [vmem:[#allocation4 + $0x88] sm:$0xf0]  ;;  %v1418_v57 = vld [vmem:[#allocation6 + $0xf0] sm:$0xf] }
  0x32   :  { %445 = vmatpush.bf16.msrb.mxu1 %v1279_v7  ;;  %409 = vmatpush.bf16.msra.mxu2 %v1187_v21  ;;  %v1239_v56 = vor.u32 %v1640_v54, %v1236_v55  ;;  %v1687_v58 = vld [vmem:[#allocation6 + $0xf4] sm:$0xf0]  ;;  %v1686_v59 = vld [vmem:[#allocation6 + $0xf4] sm:$0xf]  ;;  %v1420_v61 = vld [vmem:[#allocation6 + $0xf8] sm:$0xf0] }
  0x33   :  { %422 = vmatpush.bf16.msra.mxu3 %v1251_v24  ;;  %v1419_v60 = vor.u32 %v1687_v58, %v1418_v57  ;;  %v1410_v62 = vld [vmem:[#allocation6 + $0xe0] sm:$0xf]  ;;  %v1685_v63 = vld [vmem:[#allocation6 + $0xe4] sm:$0xf0]  ;;  %v1423_v0 = vor.u32 %v1686_v59, %v1420_v61  ;;  %v1684_v1 = vld [vmem:[#allocation6 + $0xe4] sm:$0xf] }
  0x34   :  { %v1412_v2 = vld [vmem:[#allocation6 + $0xe8] sm:$0xf0]  ;;  %v1354_v3 = vld [vmem:[#allocation6 + $0x70] sm:$0xf]  ;;  %v1411_v4 = vor.u32 %v1685_v63, %v1410_v62  ;;  %v1671_v5 = vld [vmem:[#allocation6 + $0x74] sm:$0xf0] }
  0x35   :  { %433 = vmatpush.bf16.msrb.mxu0 %v1207_v17  ;;  %v1670_v6 = vld [vmem:[#allocation6 + $0x74] sm:$0xf]  ;;  %v1356_v7 = vld [vmem:[#allocation6 + $0x78] sm:$0xf0]  ;;  %v1415_v8 = vor.u32 %v1684_v1, %v1412_v2  ;;  %v1355_v9 = vor.u32 %v1671_v5, %v1354_v3  ;;  %v1402_v11 = vld [vmem:[#allocation6 + $0xd0] sm:$0xf] }
  0x36   :  { %446 = vmatpush.bf16.msrb.mxu1 %v1271_v18  ;;  %410 = vmatpush.bf16.msra.mxu2 %v1179_v36  ;;  %v1359_v10 = vor.u32 %v1670_v6, %v1356_v7  ;;  %v1683_v12 = vld [vmem:[#allocation6 + $0xd4] sm:$0xf0]  ;;  %v1682_v13 = vld [vmem:[#allocation6 + $0xd4] sm:$0xf]  ;;  %v1404_v14 = vld [vmem:[#allocation6 + $0xd8] sm:$0xf0] }
  0x37   :  { %423 = vmatpush.bf16.msra.mxu3 %v1243_v40  ;;  %v1346_v15 = vld [vmem:[#allocation6 + $0x60] sm:$0xf]  ;;  %v1669_v16 = vld [vmem:[#allocation6 + $0x64] sm:$0xf0]  ;;  %v1668_v18 = vld [vmem:[#allocation6 + $0x64] sm:$0xf]  ;;  %v1403_v20 = vor.u32 %v1683_v12, %v1402_v11  ;;  %v1407_v24 = vor.u32 %v1682_v13, %v1404_v14 }
  0x38   :  { %v1347_v17 = vor.u32 %v1669_v16, %v1346_v15  ;;  %v1348_v19 = vld [vmem:[#allocation6 + $0x68] sm:$0xf0]  ;;  %v1394_v22 = vld [vmem:[#allocation6 + $0xc0] sm:$0xf]  ;;  %v1681_v23 = vld [vmem:[#allocation6 + $0xc4] sm:$0xf0] }
  0x39   :  { %434 = vmatpush.bf16.msrb.mxu0 %v1199_v25  ;;  %v1351_v21 = vor.u32 %v1668_v18, %v1348_v19  ;;  %v1338_v25 = vld [vmem:[#allocation6 + $0x50] sm:$0xf]  ;;  %v1666_v27 = vld [vmem:[#allocation6 + $0x54] sm:$0xf]  ;;  %v1680_v28 = vld [vmem:[#allocation6 + $0xc4] sm:$0xf]  ;;  %v1395_v34 = vor.u32 %v1681_v23, %v1394_v22 }
  0x3a   :  { %447 = vmatpush.bf16.msrb.mxu1 %v1263_v26  ;;  %411 = vmatpush.bf16.msra.mxu2 %v1171_v48  ;;  %v1667_v26 = vld [vmem:[#allocation6 + $0x54] sm:$0xf0]  ;;  %v1396_v29 = vld [vmem:[#allocation6 + $0xc8] sm:$0xf0]  ;;  %v1340_v30 = vld [vmem:[#allocation6 + $0x58] sm:$0xf0] }
  0x3b   :  { %424 = vmatpush.bf16.msra.mxu3 %v1235_v52  ;;  %v1330_v33 = vld [vmem:[#allocation6 + $0x40] sm:$0xf]  ;;  %v1665_v35 = vld [vmem:[#allocation6 + $0x44] sm:$0xf0]  ;;  %v1664_v36 = vld [vmem:[#allocation6 + $0x44] sm:$0xf]  ;;  %v1399_v38 = vor.u32 %v1680_v28, %v1396_v29 }
  0x3c   :  { %v1332_v37 = vld [vmem:[#allocation6 + $0x48] sm:$0xf0]  ;;  %v1386_v39 = vld [vmem:[#allocation6 + $0xb0] sm:$0xf]  ;;  %v1679_v40 = vld [vmem:[#allocation6 + $0xb4] sm:$0xf0]  ;;  %v1331_v43 = vor.u32 %v1665_v35, %v1330_v33 }
  0x3d   :  { %435 = vmatpush.bf16.msrb.mxu0 %v1191_v31  ;;  %v1339_v31 = vor.u32 %v1667_v26, %v1338_v25  ;;  %v1388_v42 = vld [vmem:[#allocation6 + $0xb8] sm:$0xf0]  ;;  %v1387_v45 = vor.u32 %v1679_v40, %v1386_v39  ;;  %v1378_v47 = vld [vmem:[#allocation6 + $0xa0] sm:$0xf]  ;;  %v1677_v48 = vld [vmem:[#allocation6 + $0xa4] sm:$0xf0] }
  0x3e   :  { %448 = vmatpush.bf16.msrb.mxu1 %v1255_v32  ;;  %658 = vmatpush.bf16.msrb.mxu2 %v1355_v9  ;;  %v1343_v32 = vor.u32 %v1666_v27, %v1340_v30  ;;  %v126_v49 = vld [vmem:[%s1981_s2] sm:$0x3]  ;;  %v1676_v50 = vld [vmem:[#allocation6 + $0xa4] sm:$0xf]  ;;  %v1380_v51 = vld [vmem:[#allocation6 + $0xa8] sm:$0xf0]  ;;  %v1379_v52 = vor.u32 %v1677_v48, %v1378_v47 }
  0x3f   :  { %671 = vmatpush.bf16.msrb.mxu3 %v1419_v60  ;;  %v1383_v54 = vor.u32 %v1676_v50, %v1380_v51  ;;  %v129_v55 = vperm.slane %v126_v49, 1  ;;  %v1322_v2 = vld [vmem:[#allocation6 + $0x30] sm:$0xf]  ;;  %v1663_v3 = vld [vmem:[#allocation6 + $0x34] sm:$0xf0] }
  0x40   :  { %v1323_v5 = vor.u32 %v1663_v3, %v1322_v2  ;;  %v1324_v6 = vld [vmem:[#allocation6 + $0x38] sm:$0xf0]  ;;  %v1675_v9 = vld [vmem:[#allocation6 + $0x94] sm:$0xf0]  ;;  %v1314_v14 = vld [vmem:[#allocation6 + $0x20] sm:$0xf] }
  0x41   :  { %436 = vmatpush.bf16.msrb.mxu0 %v1183_v41  ;;  %v1678_v41 = vld [vmem:[#allocation6 + $0xb4] sm:$0xf]  ;;  %v1372_v12 = vld [vmem:[#allocation6 + $0x98] sm:$0xf0]  ;;  %v1661_v15 = vld [vmem:[#allocation6 + $0x24] sm:$0xf0] }
  0x42   :  { %449 = vmatpush.bf16.msrb.mxu1 %v1247_v44  ;;  %659 = vmatpush.bf16.msrb.mxu2 %v1347_v17  ;;  %v1335_v44 = vor.u32 %v1664_v36, %v1332_v37  ;;  %v1391_v46 = vor.u32 %v1678_v41, %v1388_v42  ;;  %v1660_v16 = vld [vmem:[#allocation6 + $0x24] sm:$0xf]  ;;  %v1315_v17 = vor.u32 %v1661_v15, %v1314_v14  ;;  %v1316_v18 = vld [vmem:[#allocation6 + $0x28] sm:$0xf0]  ;;  %v1306_v26 = vld [vmem:[#allocation6 + $0x10] sm:$0xf] }
  0x43   :  { %672 = vmatpush.bf16.msrb.mxu3 %v1411_v4  ;;  %v1662_v4 = vld [vmem:[#allocation6 + $0x34] sm:$0xf]  ;;  %v1319_v19 = vor.u32 %v1660_v16, %v1316_v18  ;;  %v1672_v22 = vld [vmem:[#allocation6 + $0x84] sm:$0xf]  ;;  %v1659_v27 = vld [vmem:[#allocation6 + $0x14] sm:$0xf0] }
  0x44   :  { %v1327_v7 = vor.u32 %v1662_v4, %v1324_v6  ;;  %v1307_v28 = vor.u32 %v1659_v27, %v1306_v26  ;;  %v1658_v29 = vld [vmem:[#allocation6 + $0x14] sm:$0xf]  ;;  %v1308_v30 = vld [vmem:[#allocation6 + $0x18] sm:$0xf0]  ;;  %v1657_v33 = vld [vmem:[#allocation6 + $0x4] sm:$0xf0] }
  0x45   :  { %437 = vmatpush.bf16.msrb.mxu0 %v1175_v53  ;;  %v128_v53 = vperm.slane %v126_v49, 0  ;;  %v1300_v36 = vld [vmem:[#allocation6 + $0x8] sm:$0xf0]  ;;  %v1719_v39 = vld [vmem:[#allocation7 + $0xf4] sm:$0xf0] }
  0x46   :  { %450 = vmatpush.bf16.msrb.mxu1 %v1239_v56  ;;  %660 = vmatpush.bf16.msrb.mxu2 %v1339_v31  ;;  %v1311_v31 = vor.u32 %v1658_v29, %v1308_v30  ;;  %v1718_v40 = vld [vmem:[#allocation7 + $0xf4] sm:$0xf]  ;;  %v1548_v42 = vld [vmem:[#allocation7 + $0xf8] sm:$0xf0]  ;;  %v1540_v47 = vld [vmem:[#allocation7 + $0xe8] sm:$0xf0] }
  0x47   :  { %673 = vmatpush.bf16.msrb.mxu3 %v1403_v20  ;;  %v1362_v20 = vld [vmem:[#allocation6 + $0x80] sm:$0xf]  ;;  %v1482_v48 = vld [vmem:[#allocation7 + $0x70] sm:$0xf]  ;;  %v1703_v50 = vld [vmem:[#allocation7 + $0x74] sm:$0xf0] }
  0x48   :  { %v1702_v51 = vld [vmem:[#allocation7 + $0x74] sm:$0xf]  ;;  %v1522_v3 = vld [vmem:[#allocation7 + $0xc0] sm:$0xf]  ;;  %v1713_v4 = vld [vmem:[#allocation7 + $0xc4] sm:$0xf0] }
  0x49   :  { %684 = vmatpush.bf16.msra.mxu0 %v1359_v10  ;;  %v1674_v10 = vld [vmem:[#allocation6 + $0x94] sm:$0xf]  ;;  %v1466_v6 = vld [vmem:[#allocation7 + $0x50] sm:$0xf]  ;;  %v238_v14 = vld [vmem:[%s1983_s4] sm:$0x3]  ;;  %v1523_v15 = vor.u32 %v1713_v4, %v1522_v3 }
  0x4a   :  { %697 = vmatpush.bf16.msra.mxu1 %v1423_v0  ;;  %661 = vmatpush.bf16.msrb.mxu2 %v1331_v43  ;;  %v1375_v13 = vor.u32 %v1674_v10, %v1372_v12  ;;  %v1538_v43 = vld [vmem:[#allocation7 + $0xe0] sm:$0xf]  ;;  %v1524_v10 = vld [vmem:[#allocation7 + $0xc8] sm:$0xf0]  ;;  %v1692_v3 = vld [vmem:[#allocation7 + $0x24] sm:$0xf] }
  0x4b   :  { %674 = vmatpush.bf16.msrb.mxu3 %v1395_v34  ;;  %v1656_v34 = vld [vmem:[#allocation6 + $0x4] sm:$0xf] }
  0x4c   :  { %v1303_v37 = vor.u32 %v1656_v34, %v1300_v36  ;;  %v1711_v36 = vld [vmem:[#allocation7 + $0xb4] sm:$0xf0] }
  0x4d   :  { %685 = vmatpush.bf16.msra.mxu0 %v1351_v21  ;;  %v1673_v21 = vld [vmem:[#allocation6 + $0x84] sm:$0xf0] }
  0x4e   :  { %698 = vmatpush.bf16.msra.mxu1 %v1415_v8  ;;  %v1370_v8 = vld [vmem:[#allocation6 + $0x90] sm:$0xf]  ;;  %662 = vmatpush.bf16.msrb.mxu2 %v1323_v5  ;;  %v1363_v23 = vor.u32 %v1673_v21, %v1362_v20 }
  0x4f   :  { %675 = vmatpush.bf16.msrb.mxu3 %v1387_v45  ;;  %v1371_v11 = vor.u32 %v1675_v9, %v1370_v8  ;;  %v1551_v45 = vor.u32 %v1718_v40, %v1548_v42  ;;  %v1698_v8 = vld [vmem:[#allocation7 + $0x54] sm:$0xf]  ;;  %v1712_v9 = vld [vmem:[#allocation7 + $0xc4] sm:$0xf]  ;;  %v1697_v42 = vld [vmem:[#allocation7 + $0x44] sm:$0xf0] }
  0x50   :  { %v1527_v16 = vor.u32 %v1712_v9, %v1524_v10  ;;  %v1704_v9 = vld [vmem:[#allocation7 + $0x84] sm:$0xf] }
  0x51   :  { %686 = vmatpush.bf16.msra.mxu0 %v1343_v32  ;;  %v1298_v32 = vld [vmem:[#allocation6] sm:$0xf] }
  0x52   :  { %699 = vmatpush.bf16.msra.mxu1 %v1407_v24  ;;  %663 = vmatpush.bf16.msrb.mxu2 %v1315_v17  ;;  %v1364_v24 = vld [vmem:[#allocation6 + $0x88] sm:$0xf0]  ;;  %v1299_v35 = vor.u32 %v1657_v33, %v1298_v32  ;;  %v241_v17 = vperm.slane %v238_v14, 1 }
  0x53   :  { %676 = vmatpush.bf16.msrb.mxu3 %v1379_v52  ;;  %v1367_v25 = vor.u32 %v1672_v22, %v1364_v24  ;;  %v1484_v52 = vld [vmem:[#allocation7 + $0x78] sm:$0xf0]  ;;  %v240_v22 = vperm.slane %v238_v14, 0  ;;  %v1691_v14 = vld [vmem:[#allocation7 + $0x14] sm:$0xf0] }
  0x55   :  { %687 = vmatpush.bf16.msra.mxu0 %v1335_v44  ;;  %v1717_v44 = vld [vmem:[#allocation7 + $0xe4] sm:$0xf0] }
  0x56   :  { %700 = vmatpush.bf16.msra.mxu1 %v1399_v38  ;;  %664 = vmatpush.bf16.msrb.mxu2 %v1307_v28  ;;  %v1546_v38 = vld [vmem:[#allocation7 + $0xf0] sm:$0xf]  ;;  %v1539_v49 = vor.u32 %v1717_v44, %v1538_v43  ;;  %v1696_v43 = vld [vmem:[#allocation7 + $0x44] sm:$0xf] }
  0x57   :  { %677 = vmatpush.bf16.msrb.mxu3 %v1371_v11  ;;  %v1547_v41 = vor.u32 %v1719_v39, %v1546_v38  ;;  %v1468_v11 = vld [vmem:[#allocation7 + $0x58] sm:$0xf0] }
  0x58   :  { %v1516_v39 = vld [vmem:[#allocation7 + $0xb8] sm:$0xf0] }
  0x59   :  { %688 = vmatpush.bf16.msra.mxu0 %v1327_v7  ;;  %v1699_v7 = vld [vmem:[#allocation7 + $0x54] sm:$0xf0] }
  0x5a   :  { %701 = vmatpush.bf16.msra.mxu1 %v1391_v46  ;;  %665 = vmatpush.bf16.msrb.mxu2 %v1299_v35  ;;  %v1716_v46 = vld [vmem:[#allocation7 + $0xe4] sm:$0xf]  ;;  %v1467_v12 = vor.u32 %v1699_v7, %v1466_v6  ;;  %v1514_v35 = vld [vmem:[#allocation7 + $0xb0] sm:$0xf]  ;;  %v1490_v7 = vld [vmem:[#allocation7 + $0x80] sm:$0xf] }
  0x5b   :  { %678 = vmatpush.bf16.msrb.mxu3 %v1363_v23  ;;  %v1515_v38 = vor.u32 %v1711_v36, %v1514_v35 }
  0x5d   :  { %689 = vmatpush.bf16.msra.mxu0 %v1319_v19 }
  0x5e   :  { %702 = vmatpush.bf16.msra.mxu1 %v1383_v54  ;;  %v1483_v54 = vor.u32 %v1703_v50, %v1482_v48  ;;  %v1708_v50 = vld [vmem:[#allocation7 + $0xa4] sm:$0xf] }
  0x61   :  { %690 = vmatpush.bf16.msra.mxu0 %v1311_v31 }
  0x62   :  { %703 = vmatpush.bf16.msra.mxu1 %v1375_v13  ;;  %v1471_v13 = vor.u32 %v1698_v8, %v1468_v11  ;;  %v1705_v8 = vld [vmem:[#allocation7 + $0x84] sm:$0xf0]  ;;  %v1492_v11 = vld [vmem:[#allocation7 + $0x88] sm:$0xf0] }
  0x63   :  { %v1491_v10 = vor.u32 %v1705_v8, %v1490_v7 }
  0x65   :  { %691 = vmatpush.bf16.msra.mxu0 %v1303_v37  ;;  %v1710_v37 = vld [vmem:[#allocation7 + $0xb4] sm:$0xf] }
  0x66   :  { %704 = vmatpush.bf16.msra.mxu1 %v1367_v25  ;;  %v1519_v40 = vor.u32 %v1710_v37, %v1516_v39 }
  0xa5   :  { %v185_v56 = vpop.f32.mrf.mxu0 }
  0xa6   :  { %v186_v57 = vadd.f32 %v185_v56, %v128_v53  ;;  %v198_v58 = vpop.f32.mrf.mxu1  ;;  %v1543_v53 = vor.u32 %v1716_v46, %v1540_v47  ;;  %v1530_v56 = vld [vmem:[#allocation7 + $0xd0] sm:$0xf]  ;;  %v1506_v46 = vld [vmem:[#allocation7 + $0xa0] sm:$0xf]  ;;  %v1709_v47 = vld [vmem:[#allocation7 + $0xa4] sm:$0xf0] }
  0xa7   :  { %v199_v59 = vadd.f32 %v198_v58, %v129_v55  ;;  %v1487_v55 = vor.u32 %v1702_v51, %v1484_v52  ;;  %v1714_v58 = vld [vmem:[#allocation7 + $0xd4] sm:$0xf]  ;;  %v1508_v51 = vld [vmem:[#allocation7 + $0xa8] sm:$0xf0] }
  0xa8   :  { %v202_v60 = vmax.f32 %v186_v57, 0.0  ;;  %v1715_v57 = vld [vmem:[#allocation7 + $0xd4] sm:$0xf0]  ;;  %v1511_v52 = vor.u32 %v1708_v50, %v1508_v51 }
  0xa9   :  { %v203_v61 = vmax.f32 %v199_v59, 0.0  ;;  %v1532_v59 = vld [vmem:[#allocation7 + $0xd8] sm:$0xf0] }
  0xaa   :  { %v204_v62 = vpack.c.bf16 %v202_v60, %v202_v60  ;;  %v1474_v60 = vld [vmem:[#allocation7 + $0x60] sm:$0xf]  ;;  %v1535_v5 = vor.u32 %v1714_v58, %v1532_v59  ;;  %v1498_v59 = vld [vmem:[#allocation7 + $0x90] sm:$0xf]  ;;  %v1731_v51 = vld [vmem:[#allocation9 + $0x58] sm:$0xff] }
  0xab   :  { %v205_v63 = vpack.c.bf16 %v203_v61, %v203_v61  ;;  %v1701_v61 = vld [vmem:[#allocation7 + $0x64] sm:$0xf0] }
  0xac   :  { %412 = vmatmul.bf16.vlgmr.msra.gmra.mxu2 %v204_v62  ;;  %438 = vmatmul.bf16.vlgmr.msrb.gmra.mxu0 %v204_v62  ;;  %v1475_v62 = vor.u32 %v1701_v61, %v1474_v60  ;;  %v1707_v60 = vld [vmem:[#allocation7 + $0x94] sm:$0xf0] }
  0xad   :  { %425 = vmatmul.bf16.vlgmr.msra.gmra.mxu3 %v205_v63  ;;  %451 = vmatmul.bf16.vlgmr.msrb.gmra.mxu1 %v205_v63  ;;  %v187_v0 = vpop.f32.mrf.mxu0  ;;  %v1700_v63 = vld [vmem:[#allocation7 + $0x64] sm:$0xf]  ;;  %v1499_v61 = vor.u32 %v1707_v60, %v1498_v59 }
  0xae   :  { %v200_v1 = vpop.f32.mrf.mxu1  ;;  %925 = vmatpush.bf16.msra.mxu3 %v1547_v41  ;;  %951 = vmatpush.bf16.msrb.mxu1 %v1551_v45  ;;  %v1476_v0 = vld [vmem:[#allocation7 + $0x68] sm:$0xf0]  ;;  %v1458_v41 = vld [vmem:[#allocation7 + $0x40] sm:$0xf] }
  0xaf   :  { %912 = vmatpush.bf16.msra.mxu2 %v1483_v54  ;;  %938 = vmatpush.bf16.msrb.mxu0 %v1487_v55  ;;  %v1531_v1 = vor.u32 %v1715_v57, %v1530_v56  ;;  %v1479_v2 = vor.u32 %v1700_v63, %v1476_v0  ;;  %v1459_v44 = vor.u32 %v1697_v42, %v1458_v41  ;;  %v1460_v45 = vld [vmem:[#allocation7 + $0x48] sm:$0xf0]  ;;  %v1695_v54 = vld [vmem:[#allocation7 + $0x34] sm:$0xf0]  ;;  %v1694_v55 = vld [vmem:[#allocation7 + $0x34] sm:$0xf] }
  0xb0   :  { %v1463_v48 = vor.u32 %v1696_v43, %v1460_v45  ;;  %v1452_v57 = vld [vmem:[#allocation7 + $0x38] sm:$0xf0]  ;;  %v1720_v59 = vld [vmem:[#allocation9] sm:$0xff] }
  0xb1   :  { %v1455_v58 = vor.u32 %v1694_v55, %v1452_v57  ;;  %v1500_v63 = vld [vmem:[#allocation7 + $0x98] sm:$0xf0]  ;;  %v1729_v55 = vld [vmem:[#allocation9 + $0x48] sm:$0xff]  ;;  %v1728_v57 = vld [vmem:[#allocation9 + $0x40] sm:$0xff] }
  0xb2   :  { %926 = vmatpush.bf16.msra.mxu3 %v1539_v49  ;;  %952 = vmatpush.bf16.msrb.mxu1 %v1543_v53  ;;  %v1507_v49 = vor.u32 %v1709_v47, %v1506_v46  ;;  %v1450_v53 = vld [vmem:[#allocation7 + $0x30] sm:$0xf] }
  0xb3   :  { %913 = vmatpush.bf16.msra.mxu2 %v1475_v62  ;;  %939 = vmatpush.bf16.msrb.mxu0 %v1479_v2  ;;  %v1451_v56 = vor.u32 %v1695_v54, %v1450_v53  ;;  %v1706_v62 = vld [vmem:[#allocation7 + $0x94] sm:$0xf]  ;;  %v1693_v2 = vld [vmem:[#allocation7 + $0x24] sm:$0xf0]  ;;  %v1723_v54 = vld [vmem:[#allocation9 + $0x18] sm:$0xff] }
  0xb4   :  { %v1503_v0 = vor.u32 %v1706_v62, %v1500_v63  ;;  %v1730_v53 = vld [vmem:[#allocation9 + $0x50] sm:$0xff] }
  0xb6   :  { %927 = vmatpush.bf16.msra.mxu3 %v1531_v1  ;;  %953 = vmatpush.bf16.msrb.mxu1 %v1535_v5  ;;  %v1442_v1 = vld [vmem:[#allocation7 + $0x20] sm:$0xf]  ;;  %v1444_v5 = vld [vmem:[#allocation7 + $0x28] sm:$0xf0] }
  0xb7   :  { %914 = vmatpush.bf16.msra.mxu2 %v1467_v12  ;;  %940 = vmatpush.bf16.msrb.mxu0 %v1471_v13  ;;  %v1443_v4 = vor.u32 %v1693_v2, %v1442_v1  ;;  %v1447_v6 = vor.u32 %v1692_v3, %v1444_v5  ;;  %v1495_v12 = vor.u32 %v1704_v9, %v1492_v11  ;;  %v1434_v13 = vld [vmem:[#allocation7 + $0x10] sm:$0xf] }
  0xba   :  { %928 = vmatpush.bf16.msra.mxu3 %v1523_v15  ;;  %954 = vmatpush.bf16.msrb.mxu1 %v1527_v16  ;;  %v1435_v15 = vor.u32 %v1691_v14, %v1434_v13  ;;  %v1690_v16 = vld [vmem:[#allocation7 + $0x14] sm:$0xf] }
  0xbb   :  { %915 = vmatpush.bf16.msra.mxu2 %v1459_v44  ;;  %941 = vmatpush.bf16.msrb.mxu0 %v1463_v48 }
  0xbe   :  { %929 = vmatpush.bf16.msra.mxu3 %v1515_v38  ;;  %955 = vmatpush.bf16.msrb.mxu1 %v1519_v40 }
  0xbf   :  { %916 = vmatpush.bf16.msra.mxu2 %v1451_v56  ;;  %942 = vmatpush.bf16.msrb.mxu0 %v1455_v58  ;;  %v1722_v56 = vld [vmem:[#allocation9 + $0x10] sm:$0xff]  ;;  %v1721_v58 = vld [vmem:[#allocation9 + $0x8] sm:$0xff] }
  0xc2   :  { %930 = vmatpush.bf16.msra.mxu3 %v1507_v49  ;;  %956 = vmatpush.bf16.msrb.mxu1 %v1511_v52  ;;  %v1724_v52 = vld [vmem:[#allocation9 + $0x20] sm:$0xff] }
  0xc3   :  { %917 = vmatpush.bf16.msra.mxu2 %v1443_v4  ;;  %943 = vmatpush.bf16.msrb.mxu0 %v1447_v6 }
  0xc6   :  { %931 = vmatpush.bf16.msra.mxu3 %v1499_v61  ;;  %957 = vmatpush.bf16.msrb.mxu1 %v1503_v0  ;;  %v746_v61 = vld [vmem:[%s1987_s8] sm:$0x3] }
  0xc7   :  { %918 = vmatpush.bf16.msra.mxu2 %v1435_v15  ;;  %v749_v62 = vperm.slane %v746_v61, 1  ;;  %v748_v4 = vperm.slane %v746_v61, 0 }
  0xca   :  { %932 = vmatpush.bf16.msra.mxu3 %v1491_v10  ;;  %958 = vmatpush.bf16.msrb.mxu1 %v1495_v12 }
 0x129   :  { %v439_v18 = vpop.f32.mrf.mxu0 }
 0x12a   :  { %v440_v19 = vadd.f32 %v439_v18, %v241_v17  ;;  %v452_v20 = vpop.f32.mrf.mxu1  ;;  %v1436_v17 = vld [vmem:[#allocation7 + $0x18] sm:$0xf0] }
 0x12b   :  { %v1439_v18 = vor.u32 %v1690_v16, %v1436_v17  ;;  %v1745_v16 = vld [vmem:[%s1989_s10] ss:$0 sm:$0xff] }
 0x12c   :  { %v453_v21 = vadd.f32 %v452_v20, %v440_v19  ;;  %v1426_v19 = vld [vmem:[#allocation7] sm:$0xf]  ;;  %v1689_v20 = vld [vmem:[#allocation7 + $0x4] sm:$0xf0] }
 0x12d   :  { %944 = vmatpush.bf16.msrb.mxu0 %v1439_v18 }
 0x12e   :  { %v457_v23 = vmax.f32 %v453_v21, 0.0  ;;  %v1688_v21 = vld [vmem:[#allocation7 + $0x4] sm:$0xf] }
 0x12f   :  { %v413_v24 = vpop.f32.mrf.mxu2 }
 0x130   :  { %v459_v25 = vpack.c.bf16 %v457_v23, %v457_v23  ;;  %v414_v26 = vadd.f32 %v413_v24, %v240_v22  ;;  %v426_v27 = vpop.f32.mrf.mxu3  ;;  %v1427_v22 = vor.u32 %v1689_v20, %v1426_v19  ;;  %v1428_v23 = vld [vmem:[#allocation7 + $0x8] sm:$0xf0] }
 0x131   :  { %v441_v28 = vpop.f32.mrf.mxu0  ;;  %v1431_v24 = vor.u32 %v1688_v21, %v1428_v23 }
 0x132   :  { %v427_v29 = vadd.f32 %v426_v27, %v414_v26  ;;  %v454_v30 = vpop.f32.mrf.mxu1  ;;  %679 = vmatmul.bf16.vlgmr.msrb.gmra.mxu3 %v459_v25  ;;  %705 = vmatmul.bf16.vlgmr.msra.gmra.mxu1 %v459_v25  ;;  %v1735_v25 = vld [vmem:[#allocation9 + $0x78] sm:$0xff]  ;;  %v1734_v27 = vld [vmem:[#allocation9 + $0x70] sm:$0xff] }
 0x133   :  { %919 = vmatpush.bf16.msra.mxu2 %v1427_v22  ;;  %945 = vmatpush.bf16.msrb.mxu0 %v1431_v24  ;;  %v1727_v26 = vld [vmem:[#allocation9 + $0x38] sm:$0xff]  ;;  %v1726_v28 = vld [vmem:[#allocation9 + $0x30] sm:$0xff]  ;;  %v1725_v30 = vld [vmem:[#allocation9 + $0x28] sm:$0xff] }
 0x134   :  { %v456_v31 = vmax.f32 %v427_v29, 0.0  ;;  %1113 = vmatpush.bf16.msrb.mxu3 %v1735_v25  ;;  %v1733_v29 = vld [vmem:[#allocation9 + $0x68] sm:$0xff] }
 0x136   :  { %v458_v32 = vpack.c.bf16 %v456_v31, %v456_v31  ;;  %v1732_v31 = vld [vmem:[#allocation9 + $0x60] sm:$0xff] }
 0x137   :  { %v415_v33 = vpop.f32.mrf.mxu2 }
 0x138   :  { %v428_v34 = vpop.f32.mrf.mxu3  ;;  %666 = vmatmul.bf16.vlgmr.msrb.gmra.mxu2 %v458_v32  ;;  %692 = vmatmul.bf16.vlgmr.msra.gmra.mxu0 %v458_v32  ;;  %v492_v33 = vld [vmem:[%s1985_s6] sm:$0x3] }
 0x139   :  { %1100 = vmatpush.bf16.msrb.mxu2 %v1727_v26  ;;  %1114 = vmatpush.bf16.msrb.mxu3 %v1734_v27  ;;  %v495_v34 = vperm.slane %v492_v33, 1  ;;  %v494_v40 = vperm.slane %v492_v33, 0 }
 0x13d   :  { %1101 = vmatpush.bf16.msrb.mxu2 %v1726_v28  ;;  %1115 = vmatpush.bf16.msrb.mxu3 %v1733_v29 }
 0x141   :  { %1102 = vmatpush.bf16.msrb.mxu2 %v1725_v30  ;;  %1116 = vmatpush.bf16.msrb.mxu3 %v1732_v31 }
 0x145   :  { %1117 = vmatpush.bf16.msrb.mxu3 %v1731_v51  ;;  %1103 = vmatpush.bf16.msrb.mxu2 %v1724_v52 }
 0x149   :  { %1118 = vmatpush.bf16.msrb.mxu3 %v1730_v53  ;;  %1104 = vmatpush.bf16.msrb.mxu2 %v1723_v54 }
 0x14d   :  { %1119 = vmatpush.bf16.msrb.mxu3 %v1729_v55  ;;  %1105 = vmatpush.bf16.msrb.mxu2 %v1722_v56 }
 0x151   :  { %1120 = vmatpush.bf16.msrb.mxu3 %v1728_v57  ;;  %1106 = vmatpush.bf16.msrb.mxu2 %v1721_v58 }
 0x155   :  { %1107 = vmatpush.bf16.msrb.mxu2 %v1720_v59 }
 0x1af   :  { %v706_v32 = vpop.f32.mrf.mxu1 }
 0x1b5   :  { %v680_v35 = vpop.f32.mrf.mxu3  ;;  %v693_v36 = vpop.f32.mrf.mxu0 }
 0x1b6   :  { %v694_v37 = vadd.f32 %v693_v36, %v495_v34 }
 0x1b7   :  { %v708_v38 = vpop.f32.mrf.mxu1 }
 0x1b8   :  { %v707_v39 = vadd.f32 %v706_v32, %v694_v37 }
 0x1ba   :  { %v711_v41 = vmax.f32 %v707_v39, 0.0 }
 0x1bb   :  { %v667_v42 = vpop.f32.mrf.mxu2 }
 0x1bc   :  { %v713_v43 = vpack.c.bf16 %v711_v41, %v711_v41  ;;  %v668_v44 = vadd.f32 %v667_v42, %v494_v40 }
 0x1bd   :  { %v682_v45 = vpop.f32.mrf.mxu3  ;;  %v695_v46 = vpop.f32.mrf.mxu0 }
 0x1be   :  { %v681_v47 = vadd.f32 %v680_v35, %v668_v44  ;;  %933 = vmatmul.bf16.vlgmr.msra.gmra.mxu3 %v713_v43  ;;  %959 = vmatmul.bf16.vlgmr.msrb.gmra.mxu1 %v713_v43 }
 0x1c0   :  { %v710_v48 = vmax.f32 %v681_v47, 0.0 }
 0x1c2   :  { %v712_v49 = vpack.c.bf16 %v710_v48, %v710_v48 }
 0x1c3   :  { %v669_v50 = vpop.f32.mrf.mxu2 }
 0x1c4   :  { %920 = vmatmul.bf16.vlgmr.msra.gmra.mxu2 %v712_v49  ;;  %946 = vmatmul.bf16.vlgmr.msrb.gmra.mxu0 %v712_v49 }
 0x23b   :  { %v960_v60 = vpop.f32.mrf.mxu1 }
 0x241   :  { %v934_v63 = vpop.f32.mrf.mxu3  ;;  %v947_v0 = vpop.f32.mrf.mxu0 }
 0x242   :  { %v948_v1 = vadd.f32 %v947_v0, %v749_v62 }
 0x243   :  { %v962_v2 = vpop.f32.mrf.mxu1 }
 0x244   :  { %v961_v3 = vadd.f32 %v960_v60, %v948_v1 }
 0x246   :  { %v965_v5 = vmax.f32 %v961_v3, 0.0 }
 0x247   :  { %v921_v6 = vpop.f32.mrf.mxu2 }
 0x248   :  { %v967_v7 = vpack.c.bf16 %v965_v5, %v965_v5  ;;  %v922_v8 = vadd.f32 %v921_v6, %v748_v4 }
 0x249   :  { %v936_v9 = vpop.f32.mrf.mxu3  ;;  %v949_v10 = vpop.f32.mrf.mxu0 }
 0x24a   :  { %v935_v11 = vadd.f32 %v934_v63, %v922_v8  ;;  %1121 = vmatmul.bf16.vlgmr.msrb.gmra.mxu3 %v967_v7 }
 0x24c   :  { %v964_v12 = vmax.f32 %v935_v11, 0.0 }
 0x24e   :  { %v966_v13 = vpack.c.bf16 %v964_v12, %v964_v12 }
 0x24f   :  { %v923_v14 = vpop.f32.mrf.mxu2 }
 0x250   :  { %1108 = vmatmul.bf16.vlgmr.msrb.gmra.mxu2 %v966_v13 }
 0x2cd   :  { %v1122_v15 = vpop.f32.mrf.mxu3 }
 0x2d3   :  { %v1109_v17 = vpop.f32.mrf.mxu2 }
 0x2d4   :  { %v1110_v18 = vadd.f32 %v1745_v16, %v1109_v17 }
 0x2d5   :  { %v1124_v19 = vpop.f32.mrf.mxu3 }
 0x2d6   :  { %v1123_v20 = vadd.f32 %v1122_v15, %v1110_v18 }
 0x2d8   :  { %1126 = vst [vmem:[%s1990_s11] sm:$0xff] %v1123_v20 }
 0x2db   :  { %v1111_v21 = vpop.f32.mrf.mxu2 }
 0x2dc   :  { %1131 = vsyncpa [#allocation3], 1 }
 0x2dd   :  { %1132 = vsyncpa [#allocation5], 1 }
 0x2de   :  { %1133 = vsyncpa [#allocation8], 1 }

</bundles_post_ra>
